<compile_context>
chip_gen: v6e
topology: v6e:2x2x1
jax: 0.10.0
libtpu: 0.0.40
codegen_flags: <defaults>
</compile_context>

<pallas_src>
import jax
import jax.numpy as jnp
from jax import lax
from jax.experimental import pallas as pl
from jax.experimental.pallas import tpu as pltpu


def upsampler_kernel(x_ref, w_ref, b_ref, o_ref):
    # x_ref: (1, TW, K)    bf16  phase/im2col patches for TW = TH*W output sites
    # w_ref: (K, C4P)      bf16  phase-fused weights, BN scale folded in
    # b_ref: (1, C4P)      f32   folded BN bias (replicated per phase, 0-padded)
    # o_ref: (1, TW, C4P)  f32   lane-dense output block
    acc = jnp.dot(x_ref[0], w_ref[...], preferred_element_type=jnp.float32)
    o_ref[0] = jnp.maximum(acc + b_ref[...], 0.0)


def _pick_row_tile(H, W, target_rows):
    """Largest divisor TH of H with TH*W <= target_rows and (TH*W) % 8 == 0."""
    start = min(H, max(1, target_rows // max(W, 1)))
    for th in range(start, 0, -1):
        if H % th == 0 and ((th * W) % 8 == 0 or th == H):
            return th
    return H


def upsampler_block(x_nchw, w_t, gamma, beta, running_mean, running_var,
                    eps=1e-3, target_rows=512):
    """Forward pass of UpsamplerBlock.  x_nchw: (N, Cin, H, W) float32."""
    N, Cin, H, W = x_nchw.shape
    Cout = w_t.shape[1]
    K = 4 * Cin                         # fused contraction dim (4 shifted views)
    C4 = 4 * Cout                       # 4 output phases x Cout
    C4P = ((C4 + 127) // 128) * 128     # lane-dense (multiple of 128) store width

    # ---- fold eval-mode BatchNorm ----
    scale = gamma / jnp.sqrt(running_var + eps)          # (Cout,)
    bias = beta - running_mean * scale                   # (Cout,)

    # ---- phase/im2col input: (N, H*W, 4*Cin) bf16 (no zero-inserted input) ----
    xh = jnp.transpose(x_nchw, (0, 2, 3, 1)).astype(jnp.bfloat16)    # NHWC
    xp = jnp.pad(xh, ((0, 0), (0, 1), (0, 1), (0, 0)))               # high-pad 1
    x00 = xp[:, :H, :W, :]
    x01 = xp[:, :H, 1:, :]
    x10 = xp[:, 1:, :W, :]
    x11 = xp[:, 1:, 1:, :]
    xcat = jnp.concatenate([x00, x01, x10, x11], axis=-1)            # (N,H,W,4Cin)
    xcat = xcat.reshape(N, H * W, K)

    # ---- phase-fused weight (K, C4P) with BN scale folded in ----
    T = w_t.astype(jnp.float32) * scale[None, :, None, None]         # (Cin,Cout,3,3)
    # (row_block, phase, kh, kw); rows: 0=x00, 1=x01, 2=x10, 3=x11; phase=ph*2+pw
    taps = [
        (0, 0, 1, 1),
        (1, 1, 1, 0), (0, 1, 1, 2),
        (2, 2, 0, 1), (0, 2, 2, 1),
        (3, 3, 0, 0), (2, 3, 0, 2), (1, 3, 2, 0), (0, 3, 2, 2),
    ]
    w_big = jnp.zeros((K, C4P), jnp.float32)
    for r, p, kh, kw in taps:
        w_big = w_big.at[r * Cin:(r + 1) * Cin,
                         p * Cout:(p + 1) * Cout].set(T[:, :, kh, kw])
    w_big = w_big.astype(jnp.bfloat16)

    b_big = jnp.zeros((C4P,), jnp.float32)
    for p in range(4):
        b_big = b_big.at[p * Cout:(p + 1) * Cout].set(bias)
    b_big = b_big.reshape(1, C4P)

    # ---- spatial row tiling ----
    TH = _pick_row_tile(H, W, target_rows)
    TW = TH * W

    out = pl.pallas_call(
        upsampler_kernel,
        out_shape=jax.ShapeDtypeStruct((N, H * W, C4P), jnp.float32),
        grid_spec=pltpu.PrefetchScalarGridSpec(
            num_scalar_prefetch=0,
            grid=(N, H // TH),
            in_specs=[
                pl.BlockSpec((1, TW, K), lambda n, t: (n, t, 0)),
                pl.BlockSpec((K, C4P), lambda n, t: (0, 0)),
                pl.BlockSpec((1, C4P), lambda n, t: (0, 0)),
            ],
            out_specs=pl.BlockSpec((1, TW, C4P), lambda n, t: (n, t, 0)),
        ),
        compiler_params=pltpu.CompilerParams(
            dimension_semantics=("parallel", "parallel")),
    )(xcat, w_big, b_big)

    # ---- strip lane padding, re-interleave phases, NHWC-ish -> NCHW ----
    out = out[:, :, :C4].reshape(N, H, W, 2, 2, Cout)     # (n, m, w, ph, pw, c)
    out = jnp.transpose(out, (0, 5, 1, 3, 2, 4))          # (n, c, m, ph, w, pw)
    return out.reshape(N, Cout, 2 * H, 2 * W)


# ----------------------------- references -----------------------------------

def reference_fp32(x, w_t, gamma, beta, mean, var, eps=1e-3):
    """True f32 module semantics via lax.conv_general_dilated."""
    w_conv = jnp.transpose(w_t[:, :, ::-1, ::-1], (1, 0, 2, 3))       # OIHW
    y = lax.conv_general_dilated(
        x, w_conv, window_strides=(1, 1), padding=((1, 2), (1, 2)),
        lhs_dilation=(2, 2), dimension_numbers=('NCHW', 'OIHW', 'NCHW'),
        precision=lax.Precision.HIGHEST)
    scale = gamma / jnp.sqrt(var + eps)
    bias = beta - mean * scale
    return jnp.maximum(y * scale[None, :, None, None]
                       + bias[None, :, None, None], 0.0)


def reference_bf16_operands(x, w_t, gamma, beta, mean, var, eps=1e-3):
    """Same bf16-rounded operands the kernel uses (scale folded into weight);
    differs from the Pallas output only by f32 summation order."""
    scale = gamma / jnp.sqrt(var + eps)
    bias = beta - mean * scale
    xb = x.astype(jnp.bfloat16).astype(jnp.float32)
    wb = (w_t.astype(jnp.float32) * scale[None, :, None, None]
          ).astype(jnp.bfloat16).astype(jnp.float32)
    w_conv = jnp.transpose(wb[:, :, ::-1, ::-1], (1, 0, 2, 3))
    y = lax.conv_general_dilated(
        xb, w_conv, window_strides=(1, 1), padding=((1, 2), (1, 2)),
        lhs_dilation=(2, 2), dimension_numbers=('NCHW', 'OIHW', 'NCHW'),
        precision=lax.Precision.HIGHEST)
    return jnp.maximum(y + bias[None, :, None, None], 0.0)


if __name__ == "__main__":
    key = jax.random.PRNGKey(0)
    kx, kw = jax.random.split(key)

    N, Cin, H, W = 2, 4, 16, 16
    Cout = 8

    x = jax.random.normal(kx, (N, Cin, H, W), dtype=jnp.float32)
    # ConvTranspose2d weight: (in_channels, out_channels, kH, kW), no bias.
    w_t = jax.random.normal(kw, (Cin, Cout, 3, 3), dtype=jnp.float32) * 0.1

    # Deterministic BatchNorm parameters / running stats (eval-mode BN).
    gamma = 1.0 + 0.1 * jnp.arange(Cout, dtype=jnp.float32)
    beta = 0.05 * jnp.arange(Cout, dtype=jnp.float32)
    running_mean = 0.01 * jnp.arange(Cout, dtype=jnp.float32)
    running_var = 1.0 + 0.02 * jnp.arange(Cout, dtype=jnp.float32)

    # target_rows=128 -> TH=8 -> grid (N, 2): exercises the spatial-tile path.
    out = upsampler_block(x, w_t, gamma, beta, running_mean, running_var,
                          target_rows=128)
    out = jax.block_until_ready(out)
    assert out.shape == (N, Cout, 2 * H, 2 * W), out.shape

    # Exact check (same bf16-rounded operands; only f32 sum order differs).
    ref_bm = jax.block_until_ready(
        reference_bf16_operands(x, w_t, gamma, beta, running_mean, running_var))
    err_bm = float(jnp.max(jnp.abs(out - ref_bm)))
    assert err_bm < 1e-4, f"mismatch vs bit-matched reference: {err_bm}"

    # Sanity check vs full-f32 module semantics (bf16 operand rounding only).
    ref32 = jax.block_until_ready(
        reference_fp32(x, w_t, gamma, beta, running_mean, running_var))
    err32 = float(jnp.max(jnp.abs(out - ref32)))
    assert err32 < 0.15, f"bf16 drift too large vs f32 reference: {err32}"

    print("KERNEL_OK")
</pallas_src>

<mosaic_0001>
module attributes {stable_mosaic.version = 11 : i64} {
  func.func @upsampler_kernel(%arg0: i32, %arg1: i32, %arg2: memref<1x128x16xbf16, #tpu.memory_space<vmem>>, %arg3: memref<16x128xbf16, #tpu.memory_space<vmem>>, %arg4: memref<1x128xf32, #tpu.memory_space<vmem>>, %arg5: memref<1x128x128xf32, #tpu.memory_space<vmem>>) attributes {dimension_semantics = [#tpu.dimension_semantics<parallel>, #tpu.dimension_semantics<parallel>], iteration_bounds = array<i64: 2, 2>, scalar_prefetch = 0 : i64, scratch_operands = 0 : i64, tpu.core_type = #tpu.core_type<tc>, window_params = [{transform_indices = @transform_0, window_bounds = array<i64: 1, 128, 16>}, {pipeline_mode = #tpu.pipeline_mode<synchronous>, transform_indices = @transform_1, window_bounds = array<i64: 16, 128>}, {pipeline_mode = #tpu.pipeline_mode<synchronous>, transform_indices = @transform_2, window_bounds = array<i64: 1, 128>}, {transform_indices = @transform_3, window_bounds = array<i64: 1, 128, 128>}]} {
    %c0 = arith.constant 0 : index
    %c0_0 = arith.constant 0 : index
    %c0_1 = arith.constant 0 : index
    %0 = vector.load %arg2[%c0, %c0_0, %c0_1] : memref<1x128x16xbf16, #tpu.memory_space<vmem>>, vector<1x128x16xbf16>
    %1 = vector.shape_cast %0 : vector<1x128x16xbf16> to vector<128x16xbf16>
    %c0_2 = arith.constant 0 : index
    %c0_3 = arith.constant 0 : index
    %2 = vector.load %arg3[%c0_2, %c0_3] : memref<16x128xbf16, #tpu.memory_space<vmem>>, vector<16x128xbf16>
    %cst = arith.constant dense<0.000000e+00> : vector<128x128xf32>
    %3 = tpu.matmul %1, %2, %cst {dimension_numbers = #tpu.dot_dimension_numbers<[1], [0], [0], [1], [0, 0, 1, 1], [], []>} : vector<128x16xbf16>, vector<16x128xbf16>, vector<128x128xf32> -> vector<128x128xf32>
    %c0_4 = arith.constant 0 : index
    %c0_5 = arith.constant 0 : index
    %4 = vector.load %arg4[%c0_4, %c0_5] : memref<1x128xf32, #tpu.memory_space<vmem>>, vector<1x128xf32>
    %5 = vector.broadcast %4 : vector<1x128xf32> to vector<128x128xf32>
    %6 = arith.addf %3, %5 : vector<128x128xf32>
    %cst_6 = arith.constant 0.000000e+00 : f32
    %7 = vector.broadcast %cst_6 : f32 to vector<128x128xf32>
    %8 = arith.maximumf %6, %7 : vector<128x128xf32>
    %c0_7 = arith.constant 0 : index
    %c0_8 = arith.constant 0 : index
    %c0_9 = arith.constant 0 : index
    %9 = vector.load %arg5[%c0_7, %c0_8, %c0_9] : memref<1x128x128xf32, #tpu.memory_space<vmem>>, vector<1x128x128xf32>
    %10 = vector.shape_cast %9 : vector<1x128x128xf32> to vector<128x128xf32>
    %11 = vector.shape_cast %8 : vector<128x128xf32> to vector<1x128x128xf32>
    tpu.vector_store %arg5[%c0_7, %c0_8, %c0_9], %11 {strides = array<i32>} : memref<1x128x128xf32, #tpu.memory_space<vmem>>, vector<1x128x128xf32>,
    return
  }
  func.func @transform_0(%arg0: i32, %arg1: i32) -> (i32, i32, i32) {
    %c0_i32 = arith.constant 0 : i32
    %c0_i32_0 = arith.constant 0 : i32
    return %arg0, %arg1, %c0_i32 : i32, i32, i32
  }
  func.func @transform_1(%arg0: i32, %arg1: i32) -> (i32, i32) {
    %c0_i32 = arith.constant 0 : i32
    %c0_i32_0 = arith.constant 0 : i32
    %c0_i32_1 = arith.constant 0 : i32
    return %c0_i32, %c0_i32_0 : i32, i32
  }
  func.func @transform_2(%arg0: i32, %arg1: i32) -> (i32, i32) {
    %c0_i32 = arith.constant 0 : i32
    %c0_i32_0 = arith.constant 0 : i32
    %c0_i32_1 = arith.constant 0 : i32
    return %c0_i32, %c0_i32_0 : i32, i32
  }
  func.func @transform_3(%arg0: i32, %arg1: i32) -> (i32, i32, i32) {
    %c0_i32 = arith.constant 0 : i32
    %c0_i32_0 = arith.constant 0 : i32
    return %arg0, %arg1, %c0_i32 : i32, i32, i32
  }
}

</mosaic_0001>

<bundles_post_ra>
// kernel: tpu_custom_call.1
= control target key start
LH: loop header
LB: loop body
LE: loop exit
PB: predicated region body
PF: predicated region fallthrough
CT: control target
= control target key end

     0   :  { %8 = vsyncpa [#allocation3], 0  ;;  %s982_s0 = inlined_call_operand.vmem [shape: bf16[2,256,16], index: 0, kind: input, shape index: {}]   ;;  %s983_s1 = inlined_call_operand.vmem [shape: bf16[16,128], index: 1, kind: input, shape index: {}]   ;;  %s984_s2 = inlined_call_operand.vmem [shape: f32[1,128], index: 2, kind: input, shape index: {}]   ;;  %s985_s3 = inlined_call_operand.hbm [shape: f32[2,256,128], index: 3, kind: output, shape index: {}]  }
   0x1   :  { %10 = vsyncpa [#allocation3 + $0x1], 0  ;;  %s785_s12 = smov 0   ;;  %s787_s13 = smov 0  }
   0x2   :  { %s789_s14 = smov 0   ;;  %s791_s15 = smov 0  }
   0x3   :  { %s793_s16 = smov 0   ;;  %s795_s17 = smov 0  }
   0x4   :  { %s797_s18 = smov 0   ;;  %s799_s19 = smov 0  }
   0x5 LB: > { %s524_s20 = sadd.s32 4294967295, %s760_s19   ;;  %s525_s21 = sadd.s32 4294967294, %s760_s19   ;;  %s760_s19 = sphi %s799_s19, %s16_s19   ;;  %s756_s18 = sphi %s797_s18, %s994_s18   ;;  %s752_s17 = sphi %s795_s17, %s993_s17   ;;  %s748_s16 = sphi %s793_s16, %s992_s16   ;;  %s744_s15 = sphi %s791_s15, %s991_s15   ;;  %s740_s14 = sphi %s789_s14, %s990_s14   ;;  %s736_s13 = sphi %s787_s13, %s989_s13   ;;  %s732_s12 = sphi %s785_s12, %s988_s12  }
   0x6   : > { %s25_s22 = sadd.s32 1, %s752_s17  ;;  %s28_s23 = sadd.s32 1, %s756_s18 }
   0x7   : > { %p26_p0 = scmp.ge.s32.totalorder %s25_s22, 2  ;;  %p117_p1 = scmp.ne.s32.totalorder %s740_s14, %s736_s13 }
   0x8   : > { %p118_p2 = scmp.eq.s32.totalorder %s524_s20, 3  ;;  %p123_p5 = scmp.ne.s32.totalorder %s736_s13, %s732_s12 }
   0x9   : > { %s996_s22 = smov (%p26_p0, %s25_s22), 0  ;;  %s998_s23 = smov (!%p26_p0, %s28_s23), %s756_s18 }
   0xa   : > { %s103_s24 = ssub.s32 %s752_s17, %s996_s22  ;;  %p836_p3 = por %p118_p2, %p117_p1 }
   0xb   : > { %p30_p4 = scmp.ge.s32.totalorder %s998_s23, 2  ;;  %p124_p6 = scmp.eq.s32.totalorder %s525_s21, 3 }
   0xc   : > { %p528_p7 = scmp.ge.s32.totalorder %s760_s19, 1  ;;  %p161_p9 = scmp.lt.s32.totalorder %s760_s19, 5 }
   0xd   : > { %s1000_s23 = smov (%p30_p4, %s998_s23), 0  ;;  %p845_p8 = por %p124_p6, %p123_p5 }
   0xe   : > { %s102_s27 = ssub.s32 %s756_s18, %s1000_s23  ;;  %s107_s28 = sadd.s32 1, %s740_s14 }
   0xf   : > { %s104_s29 = sor.u32 %s103_s24, %s102_s27  ;;  %p162_p10 = pnand %p528_p7, %p161_p9 }
  0x10   : > { %p105_p11 = scmp.eq.s32.totalorder %s104_s29, 0  ;;  %s860_s6 = sshll.u32 (!%p162_p10), %s744_s15, 4 }
  0x11   : > { %165 = sbr.rel (%p162_p10) target bundleno = 256 (0x100), region = 32  ;;  %p190_p12 = scmp.lt.s32.totalorder (!%p162_p10), %s748_s16, 1 }
  0x12   : > { %s854_s30 = scalar_select %p105_p11, %s740_s14, %s107_s28  }
  0x13   : > { %p192_p13 = scmp.lt.s32.totalorder (!%p162_p10), %s860_s6, 31  ;;  %s186_s15 = sand.u32 (!%p162_p10), 1, %s736_s13  }
  0x14   : > { %s529_s29 = sshll.u32 (!%p162_p10), %s186_s15, 7  ;;  %s553_s5 = sshll.u32 (!%p162_p10), %s748_s16, 5 }
  0x15   : > { %s889_s4 = scalar_lea.vmem (!%p162_p10), [#allocation2], %s529_s29  ;;  %s762_s21 = smov (!%p162_p10), [#allocation2]  }
  0x16   : > { %v659_v0 = vld [vmem:[%s983_s1] sm:$0xff]   ;;  %s191_s7 = scalar_select %p190_p12, %s748_s16, 1  ;;  %vm272_vm0 = vcmask 130048  }
  0x17   : > { %566 = vmatprep.subr.bf16.mxu0 %v659_v0  ;;  %584 = vmatprep.subr.bf16.mxu1 %v659_v0  ;;  %s193_s8 = scalar_select %p192_p13, %s860_s6, 31  ;;  %v881_v9 = vld [vmem:[%s984_s2] ss:$0 sm:$0xff] }
  0x18   : > { %567 = vmatpush3.bf16.msra.mxu0 %v659_v0  ;;  %585 = vmatpush3.bf16.msra.mxu1 %v659_v0  ;;  %s531_s9 = sshll.u32 %s191_s7, 5  ;;  %s439_s7 = sadd.s32 %s553_s5, %s860_s6 }
  0x19   : > { %s195_s10 = sadd.s32 %s531_s9, %s193_s8  ;;  %s554_s16 = sshll.u32 %s439_s7, 7 }
  0x1a   : > { %s532_s11 = sshll.u32 %s195_s10, 2  ;;  %s442_s6 = sshll.u32 %s889_s4, 4  ;;  %s924_s6 = int_to_ptr.vmem [resolvable:$true] %s442_s6 }
  0x1b   : > { %s197_s24 = scalar_lea.vmem %s982_s0, %s532_s11  ;;  %s919_s10 = scalar_lea.hbm %s985_s3, %s554_s16 }
  0x1c   : > { %v660_v1 = vld [vmem:[%s197_s24] sm:$0xff]   ;;  %v662_v3 = vld [vmem:[%s197_s24 + $0x8] sm:$0xff]   ;;  %v664_v5 = vld [vmem:[%s197_s24 + $0x10] sm:$0xff]   ;;  %s931_s11 = scalar_lea.sflag [#allocation3], %s186_s15  ;;  %s668_s20 = scalar_lea.vmem %s924_s6, 2048 }
  0x1d   : > { %v661_v2 = vld [vmem:[%s197_s24 + $0x20] sm:$0xff]   ;;  %568 = vmatprep.mubr.msk.bf16.mxu0 %vm272_vm0, %v660_v1  ;;  %v663_v4 = vld [vmem:[%s197_s24 + $0x28] sm:$0xff]   ;;  %v665_v6 = vld [vmem:[%s197_s24 + $0x30] sm:$0xff]   ;;  %p669_p0 = scmp.ne.s32.totalorder %s924_s6, %s668_s20 }
  0x1e   : > { %576 = vmatprep.mubr.msk.bf16.mxu1 %vm272_vm0, %v661_v2  ;;  %569 = vmatmul.mubr.msk.bf16.vlgmr.msra.gmra.mxu0 %vm272_vm0, %v662_v3  ;;  %v666_v7 = vld [vmem:[%s197_s24 + $0x18] sm:$0xff]  }
  0x1f   : > { %577 = vmatmul.mubr.msk.bf16.vlgmr.msra.gmra.mxu1 %vm272_vm0, %v663_v4  ;;  %572 = vmatprep.mubr.msk.bf16.mxu0 %vm272_vm0, %v664_v5  ;;  %v667_v8 = vld [vmem:[%s197_s24 + $0x38] sm:$0xff]   ;;  %p670_p1 = pnand %p669_p0, %p836_p3  ;;  %s672_s24 = sshll.u32 %s762_s21, 4  ;;  %s673_s24 = int_to_ptr.vmem [resolvable:$false] %s672_s24 }
  0x20   : > { %580 = vmatprep.mubr.msk.bf16.mxu1 %vm272_vm0, %v665_v6  ;;  %s674_s27 = scalar_lea.vmem %s673_s24, 4096  ;;  %p675_p4 = scmp.lt.s32.totalorder %s924_s6, %s673_s24 }
  0x21   : > { %p671_p2 = pneg %p670_p1  ;;  %p676_p5 = scmp.lt.s32.totalorder %s674_s27, %s668_s20 }
  0x23   : > { %p677_p6 = por %p676_p5, %p675_p4 }
  0x25   : > { %p678_p7 = pnand %p677_p6, %p671_p2 }
  0x26   : > { %573 = vmatmul.mubr.msk.bf16.gmra.mxu0 %vm272_vm0, %v666_v7 }
  0x27   : > { %581 = vmatmul.mubr.msk.bf16.gmra.mxu1 %vm272_vm0, %v667_v8 }
  0xde   : > { %v570_v10 = vpop.f32.mrf.mxu0 }
  0xdf   : > { %v340_v11 = vadd.f32 %v570_v10, %v881_v9  ;;  %v578_v12 = vpop.f32.mrf.mxu1 }
  0xe0   : > { %v372_v13 = vadd.f32 %v578_v12, %v881_v9  ;;  %v331_v14 = vpop.f32.mrf.mxu0 }
  0xe1   : > { %v396_v15 = vmax.f32 %v340_v11, 0.0  ;;  %v332_v16 = vadd.f32 %v881_v9, %v331_v14  ;;  %v363_v17 = vpop.f32.mrf.mxu1 }
  0xe2   : > { %v404_v18 = vmax.f32 %v372_v13, 0.0  ;;  %v364_v19 = vadd.f32 %v881_v9, %v363_v17  ;;  %v571_v20 = vpop.f32.mrf.mxu0 }
  0xe3   : > { %412 = vst [vmem:[%s889_s4 + $0x10] sm:$0xff] %v396_v15  ;;  %v394_v21 = vmax.f32 %v332_v16, 0.0  ;;  %v343_v22 = vadd.f32 %v571_v20, %v881_v9  ;;  %v579_v23 = vpop.f32.mrf.mxu1 }
  0xe4   : > { %420 = vst [vmem:[%s889_s4 + $0x50] sm:$0xff] %v404_v18  ;;  %v402_v24 = vmax.f32 %v364_v19, 0.0  ;;  %v375_v25 = vadd.f32 %v579_v23, %v881_v9  ;;  %v334_v26 = vpop.f32.mrf.mxu0 }
  0xe5   : > { %410 = vst [vmem:[%s889_s4] sm:$0xff] %v394_v21  ;;  %v397_v27 = vmax.f32 %v343_v22, 0.0  ;;  %v335_v28 = vadd.f32 %v881_v9, %v334_v26  ;;  %v366_v29 = vpop.f32.mrf.mxu1 }
  0xe6   : > { %418 = vst [vmem:[%s889_s4 + $0x40] sm:$0xff] %v402_v24  ;;  %v405_v30 = vmax.f32 %v375_v25, 0.0  ;;  %v367_v31 = vadd.f32 %v881_v9, %v366_v29  ;;  %v574_v32 = vpop.f32.mrf.mxu0 }
  0xe7   : > { %413 = vst [vmem:[%s889_s4 + $0x18] sm:$0xff] %v397_v27  ;;  %v395_v33 = vmax.f32 %v335_v28, 0.0  ;;  %v356_v34 = vadd.f32 %v574_v32, %v881_v9  ;;  %v582_v35 = vpop.f32.mrf.mxu1 }
  0xe8   : > { %421 = vst [vmem:[%s889_s4 + $0x58] sm:$0xff] %v405_v30  ;;  %v403_v36 = vmax.f32 %v367_v31, 0.0  ;;  %v388_v37 = vadd.f32 %v582_v35, %v881_v9  ;;  %v347_v38 = vpop.f32.mrf.mxu0 }
  0xe9   : > { %411 = vst [vmem:[%s889_s4 + $0x8] sm:$0xff] %v395_v33  ;;  %v400_v39 = vmax.f32 %v356_v34, 0.0  ;;  %v348_v40 = vadd.f32 %v881_v9, %v347_v38  ;;  %v379_v41 = vpop.f32.mrf.mxu1 }
  0xea   : > { %419 = vst [vmem:[%s889_s4 + $0x48] sm:$0xff] %v403_v36  ;;  %v408_v42 = vmax.f32 %v388_v37, 0.0  ;;  %v380_v43 = vadd.f32 %v881_v9, %v379_v41  ;;  %v575_v44 = vpop.f32.mrf.mxu0 }
  0xeb   : > { %416 = vst [vmem:[%s889_s4 + $0x30] sm:$0xff] %v400_v39  ;;  %v398_v45 = vmax.f32 %v348_v40, 0.0  ;;  %v359_v46 = vadd.f32 %v575_v44, %v881_v9  ;;  %v583_v47 = vpop.f32.mrf.mxu1 }
  0xec   : > { %424 = vst [vmem:[%s889_s4 + $0x70] sm:$0xff] %v408_v42  ;;  %v406_v48 = vmax.f32 %v380_v43, 0.0  ;;  %v391_v49 = vadd.f32 %v583_v47, %v881_v9  ;;  %v350_v50 = vpop.f32.mrf.mxu0 }
  0xed   : > { %414 = vst [vmem:[%s889_s4 + $0x20] sm:$0xff] %v398_v45  ;;  %v401_v51 = vmax.f32 %v359_v46, 0.0  ;;  %v351_v52 = vadd.f32 %v881_v9, %v350_v50  ;;  %v382_v53 = vpop.f32.mrf.mxu1 }
  0xee   : > { %422 = vst [vmem:[%s889_s4 + $0x60] sm:$0xff] %v406_v48  ;;  %v409_v54 = vmax.f32 %v391_v49, 0.0  ;;  %v383_v55 = vadd.f32 %v881_v9, %v382_v53 }
  0xef   : > { %417 = vst [vmem:[%s889_s4 + $0x38] sm:$0xff] %v401_v51  ;;  %v399_v56 = vmax.f32 %v351_v52, 0.0 }
  0xf0   : > { %425 = vst [vmem:[%s889_s4 + $0x78] sm:$0xff] %v409_v54  ;;  %v407_v57 = vmax.f32 %v383_v55, 0.0 }
  0xf1   : > { %415 = vst [vmem:[%s889_s4 + $0x28] sm:$0xff] %v399_v56 }
  0xf2   : > { %423 = vst [vmem:[%s889_s4 + $0x68] sm:$0xff] %v407_v57 }
  0xf3   : > { %681 = shalt.err (!%p678_p7)
}
  0xf4   : > { %s682_s15 = scalar_lea.hbm %s919_s10, 2048  ;;  %s686_s4 = scalar_lea.hbm %s985_s3, 8192 }
  0xf5   : > { %p683_p9 = scmp.ne.s32.totalorder %s919_s10, %s682_s15  ;;  %p687_p12 = scmp.lt.s32.totalorder %s919_s10, %s985_s3 }
  0xf6   : > { %p688_p13 = scmp.lt.s32.totalorder %s686_s4, %s682_s15 }
  0xf7   : > { %p684_p10 = pnand %p683_p9, %p836_p3 }
  0xf8   : > { %p689_p0 = por %p688_p13, %p687_p12 }
  0xf9   : > { %p685_p11 = pneg %p684_p10 }
  0xfb   : > { %p690_p1 = pnand %p689_p0, %p685_p11 }
  0xfd   : > { %693 = shalt.err (!%p690_p1)
}
  0xfe   : > { %s763_s16 = smov 128   ;;  %s764_s8 = smov 8  }
  0xff   : > { %586 = dma.vmem_to_hbm [thread:$0]  (%p836_p3), %s924_s6, 2048, %s919_s10, %s931_s11, %s763_s16, %s763_s16, %s764_s8  }
 0x100 PF: > { %p592_p2 = scmp.ge.s32.totalorder %s760_s19, 2  ;;  %s457_s9 = sand.u32 1, %s732_s12  }
 0x101   : > { %s458_s20 = scalar_lea.sflag [#allocation3], %s457_s9 }
 0x102   : > { %p589_p4 = pnand %p592_p2, %p845_p8 }
 0x104   : > { %p590_p5 = pneg %p589_p4 }
 0x106   : > { %727 = dma.done.wait (%p590_p5), %s458_s20, 2048  }
 0x107   : > { %729 = vsyncadd (%p590_p5), %s458_s20, 4294965248  ;;  %s16_s19 = sadd.s32 1, %s760_s19   ;;  %s988_s12 = smov %s736_s13 }
 0x108   : > { %p13_p6 = scmp.ge.s32.totalorder %s16_s19, 6   ;;  %s989_s13 = smov %s740_s14 }
 0x109   : > { %s990_s14 = smov %s854_s30  ;;  %s991_s15 = smov %s752_s17 }
 0x10a   : > { %s992_s16 = smov %s756_s18  ;;  %s993_s17 = smov %s996_s22 }
 0x10b   : > { %s994_s18 = smov %s1000_s23  ;;  %15 = sbr.rel (!%p13_p6) target bundleno = 5 (0x5), region = 67 }
 0x110   :  { %463 = vsyncpa [#allocation3], 1 }
 0x111   :  { %465 = vsyncpa [#allocation3 + $0x1], 1 }

</bundles_post_ra>
